<compile_context>
chip_gen: v7x
topology: tpu7x:2x2x1
jax: 0.10.0
libtpu: 0.0.40
codegen_flags: <defaults>
</compile_context>

<pallas_src>
import jax
import jax.numpy as jnp
import numpy as np
from jax.experimental import pallas as pl
from jax.experimental.pallas import tpu as pltpu


def _round_up(v, m):
    return (v + m - 1) // m * m


def mi_kernel(x_ref, z_ref, ez_ref, ex_ref, wf_ref, wbm_ref, bt_ref, bb_ref,
              y_ref):
    """One (batch-tile, N-tile) block:
         u   = (z @ Ez) * (x @ Ex)          # [tb, ctx*in] outer product
         y   = u @ Wf + x @ Wb_mat + z @ b_w.T + b_b
    All matmuls hit the MXU with f32 accumulation; no w_prime buffer.
    """
    x = x_ref[...]                                   # [tb, in]
    z = z_ref[...]                                   # [tb, ctx]

    # Lane-dense outer product u[b, c*in + i] = z[b, c] * x[b, i]
    # (selection-matrix matmuls replace an in-kernel reshape / lane relayout).
    z_rep = jnp.dot(z, ez_ref[...], preferred_element_type=jnp.float32)
    x_rep = jnp.dot(x, ex_ref[...], preferred_element_type=jnp.float32)
    u = z_rep * x_rep                                # [tb, ctx*in]

    acc = jnp.dot(u, wf_ref[...], preferred_element_type=jnp.float32)
    acc = acc + jnp.dot(x, wbm_ref[...], preferred_element_type=jnp.float32)
    acc = acc + jnp.dot(z, bt_ref[...], preferred_element_type=jnp.float32)
    acc = acc + bb_ref[...]                          # [1, tn] broadcast

    y_ref[...] = acc.astype(y_ref.dtype)


def mi_forward(x, z, W_weight, W_bias, b_weight, b_bias, *, tb=None, tn=None):
    """Pallas wrapper reproducing MI.forward.

    x:        [B, input_size]
    z:        [B, ctx_size]
    W_weight: [input_size*output_size, ctx_size]   (PyTorch Linear layout)
    W_bias:   [input_size*output_size]
    b_weight: [output_size, ctx_size]
    b_bias:   [output_size]
    returns:  [B, output_size]
    """
    B, input_size = x.shape
    _, ctx_size = z.shape
    output_size = b_weight.shape[0]
    K = ctx_size * input_size
    dtype = x.dtype

    # ---- lane-dense padding of the output dim (multiple of 128) ----
    N_pad = _round_up(max(output_size, 128), 128)
    pad_n = N_pad - output_size

    # Fused hyper-weight: Wf[c*in + i, o] = W_weight[i*out + o, c]
    Wf = (W_weight.reshape(input_size, output_size, ctx_size)
          .transpose(2, 0, 1)
          .reshape(K, output_size))
    Wbm = W_bias.reshape(input_size, output_size)      # [in, out]
    bt = b_weight.T                                    # [ctx, out]
    bb = b_bias.reshape(1, output_size)                # [1, out]
    if pad_n:
        Wf = jnp.pad(Wf, ((0, 0), (0, pad_n)))
        Wbm = jnp.pad(Wbm, ((0, 0), (0, pad_n)))
        bt = jnp.pad(bt, ((0, 0), (0, pad_n)))
        bb = jnp.pad(bb, ((0, 0), (0, pad_n)))

    # 0/1 selection matrices used in-kernel to build the outer product.
    k_idx = np.arange(K)
    Ez = jnp.asarray(k_idx[None, :] // input_size
                     == np.arange(ctx_size)[:, None], dtype=dtype)   # [ctx, K]
    Ex = jnp.asarray(k_idx[None, :] % input_size
                     == np.arange(input_size)[:, None], dtype=dtype)  # [in, K]

    # ---- batch / N tiling ----
    if tb is None:
        tb = min(256, _round_up(B, 8))
    tb = _round_up(tb, 8)
    B_pad = _round_up(B, tb)
    if tn is None:
        tn = min(512, N_pad)
    while N_pad % tn:          # N_pad is a multiple of 128, terminates >=128
        tn //= 2

    if B_pad != B:
        x = jnp.pad(x, ((0, B_pad - B), (0, 0)))
        z = jnp.pad(z, ((0, B_pad - B), (0, 0)))

    grid = (B_pad // tb, N_pad // tn)

    in_specs = [
        pl.BlockSpec((tb, input_size), lambda b, n: (b, 0)),   # x
        pl.BlockSpec((tb, ctx_size), lambda b, n: (b, 0)),     # z
        pl.BlockSpec((ctx_size, K), lambda b, n: (0, 0)),      # Ez (resident)
        pl.BlockSpec((input_size, K), lambda b, n: (0, 0)),    # Ex (resident)
        pl.BlockSpec((K, tn), lambda b, n: (0, n)),            # Wf
        pl.BlockSpec((input_size, tn), lambda b, n: (0, n)),   # Wb_mat
        pl.BlockSpec((ctx_size, tn), lambda b, n: (0, n)),     # b_weight.T
        pl.BlockSpec((1, tn), lambda b, n: (0, n)),            # b_bias
    ]
    out_specs = pl.BlockSpec((tb, tn), lambda b, n: (b, n))

    # Explicit VMEM budget (double-buffered blocks + headroom), capped for
    # v7x's 64 MiB per-core VMEM.
    block_bytes = 4 * (tb * input_size + tb * ctx_size + ctx_size * K
                       + input_size * K + K * tn + input_size * tn
                       + ctx_size * tn + tn + tb * tn)
    vmem_limit = int(min(max(4 * block_bytes, 32 * 1024 * 1024),
                         64 * 1024 * 1024))

    y_full = pl.pallas_call(
        mi_kernel,
        out_shape=jax.ShapeDtypeStruct((B_pad, N_pad), dtype),
        grid=grid,
        in_specs=in_specs,
        out_specs=out_specs,
        compiler_params=pltpu.CompilerParams(
            dimension_semantics=("parallel", "parallel"),
            vmem_limit_bytes=vmem_limit),
    )(x, z, Ez, Ex, Wf, Wbm, bt, bb)

    return y_full[:B, :output_size]


def mi_reference(x, z, W_weight, W_bias, b_weight, b_bias):
    """Pure-JAX reference matching the PyTorch semantics."""
    B, input_size = x.shape
    output_size = b_weight.shape[0]
    w_prime = (z @ W_weight.T + W_bias).reshape(B, input_size, output_size)
    b_prime = z @ b_weight.T + b_bias
    return jnp.einsum('bi,bio->bo', x, w_prime) + b_prime


if __name__ == "__main__":
    # Small shapes consistent with the module's forward contract.
    B = 2
    ctx_size = 32
    input_size = 8
    output_size = 16

    key = jax.random.PRNGKey(0)
    kx, kz, kww, kwb, kbw, kbb = jax.random.split(key, 6)

    x = jax.random.normal(kx, (B, input_size), dtype=jnp.float32)
    z = jax.random.normal(kz, (B, ctx_size), dtype=jnp.float32)

    bound_W = 1.0 / np.sqrt(ctx_size)
    W_weight = jax.random.uniform(kww, (input_size * output_size, ctx_size),
                                  minval=-bound_W, maxval=bound_W,
                                  dtype=jnp.float32)
    W_bias = jax.random.uniform(kwb, (input_size * output_size,),
                                minval=-bound_W, maxval=bound_W,
                                dtype=jnp.float32)
    b_weight = jax.random.uniform(kbw, (output_size, ctx_size),
                                  minval=-bound_W, maxval=bound_W,
                                  dtype=jnp.float32)
    b_bias = jax.random.uniform(kbb, (output_size,),
                                minval=-bound_W, maxval=bound_W,
                                dtype=jnp.float32)

    y = mi_forward(x, z, W_weight, W_bias, b_weight, b_bias)
    y = jax.block_until_ready(y)

    y_ref = mi_reference(x, z, W_weight, W_bias, b_weight, b_bias)
    np.testing.assert_allclose(np.asarray(y), np.asarray(y_ref),
                               rtol=1e-5, atol=1e-5)

    print("KERNEL_OK")
</pallas_src>

<mosaic_0001>
module attributes {stable_mosaic.version = 11 : i64} {
  func.func @mi_kernel(%arg0: i32, %arg1: i32, %arg2: memref<8x8xf32, #tpu.memory_space<vmem>>, %arg3: memref<8x32xf32, #tpu.memory_space<vmem>>, %arg4: memref<32x256xf32, #tpu.memory_space<vmem>>, %arg5: memref<8x256xf32, #tpu.memory_space<vmem>>, %arg6: memref<256x128xf32, #tpu.memory_space<vmem>>, %arg7: memref<8x128xf32, #tpu.memory_space<vmem>>, %arg8: memref<32x128xf32, #tpu.memory_space<vmem>>, %arg9: memref<1x128xf32, #tpu.memory_space<vmem>>, %arg10: memref<8x128xf32, #tpu.memory_space<vmem>>) attributes {dimension_semantics = [#tpu.dimension_semantics<parallel>, #tpu.dimension_semantics<parallel>], iteration_bounds = array<i64: 1, 1>, scalar_prefetch = 0 : i64, scratch_operands = 0 : i64, tpu.core_type = #tpu.core_type<tc>, window_params = [{transform_indices = @transform_0, window_bounds = array<i64: 8, 8>}, {transform_indices = @transform_1, window_bounds = array<i64: 8, 32>}, {pipeline_mode = #tpu.pipeline_mode<synchronous>, transform_indices = @transform_2, window_bounds = array<i64: 32, 256>}, {pipeline_mode = #tpu.pipeline_mode<synchronous>, transform_indices = @transform_3, window_bounds = array<i64: 8, 256>}, {transform_indices = @transform_4, window_bounds = array<i64: 256, 128>}, {transform_indices = @transform_5, window_bounds = array<i64: 8, 128>}, {transform_indices = @transform_6, window_bounds = array<i64: 32, 128>}, {transform_indices = @transform_7, window_bounds = array<i64: 1, 128>}, {transform_indices = @transform_8, window_bounds = array<i64: 8, 128>}]} {
    %c0 = arith.constant 0 : index
    %c0_0 = arith.constant 0 : index
    %0 = vector.load %arg2[%c0, %c0_0] : memref<8x8xf32, #tpu.memory_space<vmem>>, vector<8x8xf32>
    %c0_1 = arith.constant 0 : index
    %c0_2 = arith.constant 0 : index
    %1 = vector.load %arg3[%c0_1, %c0_2] : memref<8x32xf32, #tpu.memory_space<vmem>>, vector<8x32xf32>
    %c0_3 = arith.constant 0 : index
    %c0_4 = arith.constant 0 : index
    %2 = vector.load %arg4[%c0_3, %c0_4] : memref<32x256xf32, #tpu.memory_space<vmem>>, vector<32x256xf32>
    %cst = arith.constant dense<0.000000e+00> : vector<8x256xf32>
    %3 = tpu.matmul %1, %2, %cst {dimension_numbers = #tpu.dot_dimension_numbers<[1], [0], [0], [1], [0, 0, 1, 1], [], []>} : vector<8x32xf32>, vector<32x256xf32>, vector<8x256xf32> -> vector<8x256xf32>
    %c0_5 = arith.constant 0 : index
    %c0_6 = arith.constant 0 : index
    %4 = vector.load %arg5[%c0_5, %c0_6] : memref<8x256xf32, #tpu.memory_space<vmem>>, vector<8x256xf32>
    %cst_7 = arith.constant dense<0.000000e+00> : vector<8x256xf32>
    %5 = tpu.matmul %0, %4, %cst_7 {dimension_numbers = #tpu.dot_dimension_numbers<[1], [0], [0], [1], [0, 0, 1, 1], [], []>} : vector<8x8xf32>, vector<8x256xf32>, vector<8x256xf32> -> vector<8x256xf32>
    %6 = arith.mulf %3, %5 : vector<8x256xf32>
    %c0_8 = arith.constant 0 : index
    %c0_9 = arith.constant 0 : index
    %7 = vector.load %arg6[%c0_8, %c0_9] : memref<256x128xf32, #tpu.memory_space<vmem>>, vector<256x128xf32>
    %cst_10 = arith.constant dense<0.000000e+00> : vector<8x128xf32>
    %8 = tpu.matmul %6, %7, %cst_10 {dimension_numbers = #tpu.dot_dimension_numbers<[1], [0], [0], [1], [0, 0, 1, 1], [], []>} : vector<8x256xf32>, vector<256x128xf32>, vector<8x128xf32> -> vector<8x128xf32>
    %c0_11 = arith.constant 0 : index
    %c0_12 = arith.constant 0 : index
    %9 = vector.load %arg7[%c0_11, %c0_12] : memref<8x128xf32, #tpu.memory_space<vmem>>, vector<8x128xf32>
    %cst_13 = arith.constant dense<0.000000e+00> : vector<8x128xf32>
    %10 = tpu.matmul %0, %9, %cst_13 {dimension_numbers = #tpu.dot_dimension_numbers<[1], [0], [0], [1], [0, 0, 1, 1], [], []>} : vector<8x8xf32>, vector<8x128xf32>, vector<8x128xf32> -> vector<8x128xf32>
    %11 = arith.addf %8, %10 : vector<8x128xf32>
    %c0_14 = arith.constant 0 : index
    %c0_15 = arith.constant 0 : index
    %12 = vector.load %arg8[%c0_14, %c0_15] : memref<32x128xf32, #tpu.memory_space<vmem>>, vector<32x128xf32>
    %cst_16 = arith.constant dense<0.000000e+00> : vector<8x128xf32>
    %13 = tpu.matmul %1, %12, %cst_16 {dimension_numbers = #tpu.dot_dimension_numbers<[1], [0], [0], [1], [0, 0, 1, 1], [], []>} : vector<8x32xf32>, vector<32x128xf32>, vector<8x128xf32> -> vector<8x128xf32>
    %14 = arith.addf %11, %13 : vector<8x128xf32>
    %c0_17 = arith.constant 0 : index
    %c0_18 = arith.constant 0 : index
    %15 = vector.load %arg9[%c0_17, %c0_18] : memref<1x128xf32, #tpu.memory_space<vmem>>, vector<1x128xf32>
    %16 = vector.broadcast %15 : vector<1x128xf32> to vector<8x128xf32>
    %17 = arith.addf %14, %16 : vector<8x128xf32>
    %c0_19 = arith.constant 0 : index
    %c0_20 = arith.constant 0 : index
    %18 = vector.load %arg10[%c0_19, %c0_20] : memref<8x128xf32, #tpu.memory_space<vmem>>, vector<8x128xf32>
    tpu.vector_store %arg10[%c0_19, %c0_20], %17 {strides = array<i32>} : memref<8x128xf32, #tpu.memory_space<vmem>>, vector<8x128xf32>,
    return
  }
  func.func @transform_0(%arg0: i32, %arg1: i32) -> (i32, i32) {
    %c0_i32 = arith.constant 0 : i32
    %c0_i32_0 = arith.constant 0 : i32
    return %arg0, %c0_i32 : i32, i32
  }
  func.func @transform_1(%arg0: i32, %arg1: i32) -> (i32, i32) {
    %c0_i32 = arith.constant 0 : i32
    %c0_i32_0 = arith.constant 0 : i32
    return %arg0, %c0_i32 : i32, i32
  }
  func.func @transform_2(%arg0: i32, %arg1: i32) -> (i32, i32) {
    %c0_i32 = arith.constant 0 : i32
    %c0_i32_0 = arith.constant 0 : i32
    %c0_i32_1 = arith.constant 0 : i32
    return %c0_i32, %c0_i32_0 : i32, i32
  }
  func.func @transform_3(%arg0: i32, %arg1: i32) -> (i32, i32) {
    %c0_i32 = arith.constant 0 : i32
    %c0_i32_0 = arith.constant 0 : i32
    %c0_i32_1 = arith.constant 0 : i32
    return %c0_i32, %c0_i32_0 : i32, i32
  }
  func.func @transform_4(%arg0: i32, %arg1: i32) -> (i32, i32) {
    %c0_i32 = arith.constant 0 : i32
    %c0_i32_0 = arith.constant 0 : i32
    return %c0_i32, %arg1 : i32, i32
  }
  func.func @transform_5(%arg0: i32, %arg1: i32) -> (i32, i32) {
    %c0_i32 = arith.constant 0 : i32
    %c0_i32_0 = arith.constant 0 : i32
    return %c0_i32, %arg1 : i32, i32
  }
  func.func @transform_6(%arg0: i32, %arg1: i32) -> (i32, i32) {
    %c0_i32 = arith.constant 0 : i32
    %c0_i32_0 = arith.constant 0 : i32
    return %c0_i32, %arg1 : i32, i32
  }
  func.func @transform_7(%arg0: i32, %arg1: i32) -> (i32, i32) {
    %c0_i32 = arith.constant 0 : i32
    %c0_i32_0 = arith.constant 0 : i32
    return %c0_i32, %arg1 : i32, i32
  }
  func.func @transform_8(%arg0: i32, %arg1: i32) -> (i32, i32) {
    %c0_i32 = arith.constant 0 : i32
    return %arg0, %arg1 : i32, i32
  }
}

</mosaic_0001>

<bundles_post_ra>
// kernel: tpu_custom_call.1
= control target key start
LH: loop header
LB: loop body
LE: loop exit
PB: predicated region body
PF: predicated region fallthrough
CT: control target
= control target key end

     0   :  { %13 = vsyncpa [#allocation3], 0  ;;  %s1001_s0 = inlined_call_operand.hbm [shape: f32[8,8], index: 0, kind: input, shape index: {}]   ;;  %s1002_s1 = inlined_call_operand.hbm [shape: f32[8,32], index: 1, kind: input, shape index: {}]   ;;  %s1003_s2 = inlined_call_operand.hbm [shape: f32[32,256], index: 2, kind: input, shape index: {}]   ;;  %s1004_s3 = inlined_call_operand.hbm [shape: f32[8,256], index: 3, kind: input, shape index: {}]   ;;  %s1005_s4 = inlined_call_operand.hbm [shape: f32[256,128], index: 4, kind: input, shape index: {}]   ;;  %s1006_s5 = inlined_call_operand.vmem [shape: f32[8,128], index: 5, kind: input, shape index: {}]   ;;  %s1007_s6 = inlined_call_operand.hbm [shape: f32[32,128], index: 6, kind: input, shape index: {}]   ;;  %s1008_s7 = inlined_call_operand.vmem [shape: f32[1,128], index: 7, kind: input, shape index: {}]   ;;  %s1009_s8 = inlined_call_operand.hbm [shape: f32[8,128], index: 8, kind: output, shape index: {}]  }
   0x1   :  { %14 = vsyncpa [#allocation6], 0 }
   0x2   :  { %15 = vsyncpa [#allocation9], 0 }
   0x3   :  { %16 = vsyncpa [#allocation12], 0 }
   0x4   :  { %17 = vsyncpa [#allocation4], 0  ;;  %s832_s27 = smov [#allocation5]   ;;  %s833_s29 = smov [#allocation8]  }
   0x5   :  { %s34_s28 = sshll.u32 %s832_s27, 4  ;;  %s56_s30 = sshll.u32 %s833_s29, 4  ;;  %s35_s28 = int_to_ptr.vmem [resolvable:$true] %s34_s28  ;;  %s57_s30 = int_to_ptr.vmem [resolvable:$true] %s56_s30 }
   0x6   :  { %s668_s11 = scalar_lea.hbm %s1002_s1, 128 }
   0x7   :  { %p669_p0 = scmp.ne.s32.totalorder %s1002_s1, %s668_s11  ;;  %p672_p1 = scmp.lt.u32.totalorder %s668_s11, %s1002_s1 }
   0x9   :  { %p674_p2 = pnand %p672_p1, %p669_p0 }
   0xb   :  { %677 = shalt.err (!%p674_p2)
}
   0xc   :  { %s678_s16 = scalar_lea.vmem %s35_s28, 128  ;;  %p683_p4 = scmp.lt.s32.totalorder %s35_s28, %s35_s28 }
   0xd   :  { %p679_p3 = scmp.ne.s32.totalorder %s35_s28, %s678_s16  ;;  %p684_p5 = scmp.lt.s32.totalorder %s678_s16, %s678_s16 }
   0xf   :  { %p685_p6 = por %p684_p5, %p683_p4 }
  0x11   :  { %p686_p7 = pnand %p685_p6, %p679_p3 }
  0x13   :  { %689 = shalt.err (!%p686_p7)
}
  0x14   :  { %37 = dma.hbm_to_vmem [thread:$0]  %s1002_s1, 128, %s35_s28, [#allocation6]  }
  0x15   :  { %s690_s21 = scalar_lea.hbm %s1004_s3, 256 }
  0x16   :  { %p691_p8 = scmp.ne.s32.totalorder %s1004_s3, %s690_s21  ;;  %p694_p9 = scmp.lt.u32.totalorder %s690_s21, %s1004_s3 }
  0x18   :  { %p696_p10 = pnand %p694_p9, %p691_p8 }
  0x1a   :  { %699 = shalt.err (!%p696_p10)
}
  0x1b   :  { %s700_s26 = scalar_lea.vmem %s57_s30, 256  ;;  %p705_p12 = scmp.lt.s32.totalorder %s57_s30, %s57_s30 }
  0x1c   :  { %p701_p11 = scmp.ne.s32.totalorder %s57_s30, %s700_s26  ;;  %p706_p13 = scmp.lt.s32.totalorder %s700_s26, %s700_s26 }
  0x1e   :  { %p707_p0 = por %p706_p13, %p705_p12 }
  0x20   :  { %p708_p1 = pnand %p707_p0, %p701_p11 }
  0x22   :  { %711 = shalt.err (!%p708_p1)
}
  0x23   :  { %59 = dma.hbm_to_vmem [thread:$0]  %s1004_s3, 256, %s57_s30, [#allocation9]  }
  0x24   :  { %s834_s28 = smov [#allocation2]   ;;  %s835_s9 = smov [#allocation7]  }
  0x25   :  { %s24_s29 = sshll.u32 %s834_s28, 4  ;;  %s43_s10 = sshll.u32 %s835_s9, 4  ;;  %s25_s29 = int_to_ptr.vmem [resolvable:$true] %s24_s29  ;;  %s915_s10 = int_to_ptr.vmem [resolvable:$true] %s43_s10 }
  0x26   :  { %s712_s13 = scalar_lea.hbm %s1001_s0, 128 }
  0x27   :  { %p713_p2 = scmp.ne.s32.totalorder %s1001_s0, %s712_s13  ;;  %p716_p3 = scmp.lt.u32.totalorder %s712_s13, %s1001_s0 }
  0x29   :  { %p718_p4 = pnand %p716_p3, %p713_p2 }
  0x2b   :  { %721 = shalt.err (!%p718_p4)
}
  0x2c   :  { %s722_s3 = scalar_lea.vmem %s25_s29, 128  ;;  %p727_p6 = scmp.lt.s32.totalorder %s25_s29, %s25_s29 }
  0x2d   :  { %p723_p5 = scmp.ne.s32.totalorder %s25_s29, %s722_s3  ;;  %p728_p7 = scmp.lt.s32.totalorder %s722_s3, %s722_s3 }
  0x2f   :  { %p729_p8 = por %p728_p7, %p727_p6 }
  0x31   :  { %p730_p9 = pnand %p729_p8, %p723_p5 }
  0x33   :  { %733 = shalt.err (!%p730_p9)
}
  0x34   :  { %27 = dma.hbm_to_vmem [thread:$0]  %s1001_s0, 128, %s25_s29, [#allocation3]  }
  0x35   :  { %s734_s21 = scalar_lea.hbm %s1003_s2, 1024 }
  0x36   :  { %p735_p10 = scmp.ne.s32.totalorder %s1003_s2, %s734_s21  ;;  %p738_p11 = scmp.lt.u32.totalorder %s734_s21, %s1003_s2 }
  0x38   :  { %p740_p12 = pnand %p738_p11, %p735_p10 }
  0x3a   :  { %743 = shalt.err (!%p740_p12)
}
  0x3b   :  { %s744_s26 = scalar_lea.vmem %s915_s10, 1024  ;;  %p749_p0 = scmp.lt.s32.totalorder %s915_s10, %s915_s10 }
  0x3c   :  { %p745_p13 = scmp.ne.s32.totalorder %s915_s10, %s744_s26  ;;  %p750_p1 = scmp.lt.s32.totalorder %s744_s26, %s744_s26 }
  0x3e   :  { %p751_p2 = por %p750_p1, %p749_p0 }
  0x40   :  { %p752_p3 = pnand %p751_p2, %p745_p13 }
  0x42   :  { %755 = shalt.err (!%p752_p3)
}
  0x43   :  { %s836_s0 = smov 256   ;;  %s837_s1 = smov 16  }
  0x44   :  { %49 = dma.hbm_to_vmem [thread:$0]  %s1003_s2, 1024, %s915_s10, [#allocation6], %s836_s0, %s836_s0, %s837_s1  }
  0x45   :  { %s838_s29 = smov [#allocation10]   ;;  %s756_s13 = scalar_lea.hbm %s1005_s4, 4096 }
  0x46   :  { %s65_s9 = sshll.u32 %s838_s29, 4  ;;  %p757_p4 = scmp.ne.s32.totalorder %s1005_s4, %s756_s13  ;;  %s66_s9 = int_to_ptr.vmem [resolvable:$true] %s65_s9 }
  0x47   :  { %p760_p5 = scmp.lt.u32.totalorder %s756_s13, %s1005_s4 }
  0x49   :  { %p762_p6 = pnand %p760_p5, %p757_p4 }
  0x4b   :  { %765 = shalt.err (!%p762_p6)
}
  0x4c   :  { %s766_s3 = scalar_lea.vmem %s66_s9, 4096  ;;  %p771_p8 = scmp.lt.s32.totalorder %s66_s9, %s66_s9 }
  0x4d   :  { %p767_p7 = scmp.ne.s32.totalorder %s66_s9, %s766_s3  ;;  %p772_p9 = scmp.lt.s32.totalorder %s766_s3, %s766_s3 }
  0x4f   :  { %p773_p10 = por %p772_p9, %p771_p8 }
  0x51   :  { %p774_p11 = pnand %p773_p10, %p767_p7 }
  0x53   :  { %777 = shalt.err (!%p774_p11)
}
  0x54   :  { %s839_s2 = smov 128   ;;  %s840_s10 = smov 8  }
  0x55   :  { %71 = dma.hbm_to_vmem [thread:$0]  %s1005_s4, 4096, %s66_s9, [#allocation9], %s839_s2, %s839_s2, %s840_s10  }
  0x56   :  { %s841_s19 = smov [#allocation11]   ;;  %s778_s23 = scalar_lea.hbm %s1007_s6, 512 }
  0x57   :  { %s79_s20 = sshll.u32 %s841_s19, 4  ;;  %p779_p12 = scmp.ne.s32.totalorder %s1007_s6, %s778_s23  ;;  %s80_s20 = int_to_ptr.vmem [resolvable:$true] %s79_s20 }
  0x58   :  { %p782_p13 = scmp.lt.u32.totalorder %s778_s23, %s1007_s6 }
  0x5a   :  { %p784_p0 = pnand %p782_p13, %p779_p12 }
  0x5c   :  { %787 = shalt.err (!%p784_p0)
}
  0x5d   :  { %s788_s1 = scalar_lea.vmem %s80_s20, 512  ;;  %p793_p2 = scmp.lt.s32.totalorder %s80_s20, %s80_s20 }
  0x5e   :  { %p789_p1 = scmp.ne.s32.totalorder %s80_s20, %s788_s1  ;;  %p794_p3 = scmp.lt.s32.totalorder %s788_s1, %s788_s1 }
  0x60   :  { %p795_p4 = por %p794_p3, %p793_p2 }
  0x62   :  { %p796_p5 = pnand %p795_p4, %p789_p1 }
  0x64   :  { %799 = shalt.err (!%p796_p5)
}
  0x65   :  { %85 = dma.hbm_to_vmem [thread:$0]  %s1007_s6, 512, %s80_s20, [#allocation12], %s839_s2, %s839_s2, %s840_s10  }
  0x66   :  { %822 = dma.done.wait [#allocation3], 128  }
  0x67   :  { %823 = vsyncadd [#allocation3], 4294967168 }
  0x68   :  { %824 = dma.done.wait [#allocation6], 1152  }
  0x69   :  { %825 = vsyncadd [#allocation6], 4294966144 }
  0x6a   :  { %826 = dma.done.wait [#allocation9], 4352  }
  0x6b   :  { %827 = vsyncadd [#allocation9], 4294962944 }
  0x6c   :  { %828 = dma.done.wait [#allocation12], 512  }
  0x6d   :  { %829 = vsyncadd [#allocation12], 4294966784  ;;  %v842_v0 = vmov 0.0   ;;  %v109_v1 = vld [vmem:[#allocation7 + $0x8] sm:$0xff]  ;;  %v111_v2 = vld [vmem:[#allocation7 + $0x18] sm:$0xff]  ;;  %vm116_vm0 = vcmask 261120  }
  0x6e   :  { %184 = vmatprep.mubr.f32.mxu0 %v842_v0  ;;  %v108_v3 = vld [vmem:[#allocation7] sm:$0xff]  ;;  %v608_v4 = vpack.c.bf16 %v111_v2, %v109_v1  ;;  %v110_v5 = vld [vmem:[#allocation7 + $0x10] sm:$0xff]  ;;  %v113_v6 = vld [vmem:[#allocation7 + $0x28] sm:$0xff]  ;;  %vm193_vm1 = vcmask 64512   ;;  %vm843_vm2 = vmmov 0   ;;  %s845_s9 = smov [#allocation13]  }
  0x6f   :  { %v115_v7 = vld [vmem:[#allocation7 + $0x38] sm:$0xff]  ;;  %v610_v8 = vpack.c.bf16 %v110_v5, %v108_v3  ;;  %v112_v10 = vld [vmem:[#allocation7 + $0x20] sm:$0xff]  ;;  %v114_v11 = vld [vmem:[#allocation7 + $0x30] sm:$0xff]  ;;  %s533_s11 = sshll.u32 %s845_s9, 4  ;;  %s534_s11 = int_to_ptr.vmem [resolvable:$true] %s533_s11 }
  0x70   :  { %v612_v9 = vpack.c.bf16 %v115_v7, %v113_v6  ;;  %609 = vmatprep.subr.bf16.mxu0 %v608_v4  ;;  %v614_v12 = vpack.c.bf16 %v114_v11, %v112_v10  ;;  %v286_v13 = vld [vmem:[#allocation10 + $0x80] sm:$0xff]  ;;  %v287_v14 = vld [vmem:[#allocation10 + $0x88] sm:$0xff]  ;;  %v288_v18 = vld [vmem:[#allocation10 + $0x90] sm:$0xff]  ;;  %v844_v6 = vmov 0.0|0.0   ;;  %s800_s12 = scalar_lea.vmem %s534_s11, 128  ;;  %p805_p7 = scmp.lt.s32.totalorder %s534_s11, %s534_s11 }
  0x71   :  { %611 = vmatpush1.bf16.msra.mxu0 %v610_v8  ;;  %v270_v15 = vld [vmem:[#allocation10] sm:$0xff]  ;;  %v616_v16 = vpack.c.bf16 %v287_v14, %v286_v13  ;;  %v271_v17 = vld [vmem:[#allocation10 + $0x8] sm:$0xff]  ;;  %v289_v19 = vld [vmem:[#allocation10 + $0x98] sm:$0xff]  ;;  %p801_p6 = scmp.ne.s32.totalorder %s534_s11, %s800_s12  ;;  %p806_p8 = scmp.lt.s32.totalorder %s800_s12, %s800_s12 }
  0x72   :  { %613 = vmatprep.subr.bf16.mxu0 %v612_v9  ;;  %v192_v20 = vld [vmem:[#allocation8 + $0x8] sm:$0xff]  ;;  %v618_v21 = vpack.c.bf16 %v271_v17, %v270_v15  ;;  %v620_v22 = vpack.c.bf16 %v289_v19, %v288_v18  ;;  %v272_v23 = vld [vmem:[#allocation10 + $0x10] sm:$0xff]  ;;  %v290_v25 = vld [vmem:[#allocation10 + $0xa0] sm:$0xff] }
  0x73   :  { %v273_v24 = vld [vmem:[#allocation10 + $0x18] sm:$0xff]  ;;  %617 = vmatprep.subr.bf16.mxu1 %v616_v16  ;;  %v291_v26 = vld [vmem:[#allocation10 + $0xa8] sm:$0xff]  ;;  %v191_v28 = vld [vmem:[#allocation8] sm:$0xff]  ;;  %p807_p9 = por %p806_p8, %p805_p7 }
  0x74   :  { %v971_v27 = vld [vmem:[#allocation5] sm:$0xff]  ;;  %619 = vmatpush3.bf16.msra.mxu1 %v618_v21  ;;  %v622_v29 = vpack.c.bf16 %v273_v24, %v272_v23  ;;  %v624_v30 = vpack.c.bf16 %v291_v26, %v290_v25  ;;  %v274_v31 = vld [vmem:[#allocation10 + $0x20] sm:$0xff]  ;;  %v292_v33 = vld [vmem:[#allocation10 + $0xb0] sm:$0xff] }
  0x75   :  { %615 = vmatpush1.bf16.msra.mxu0 %v614_v12  ;;  %621 = vmatprep.subr.bf16.mxu1 %v620_v22  ;;  %v275_v32 = vld [vmem:[#allocation10 + $0x28] sm:$0xff]  ;;  %v293_v34 = vld [vmem:[#allocation10 + $0xb8] sm:$0xff]  ;;  %v106_v35 = vld [vmem:[#allocation2] sm:$0xff]  ;;  %p808_p10 = pnand %p807_p9, %p801_p6 }
  0x76   :  { %197 = vmatprep.subr.mxu0 %v192_v20  ;;  %v626_v36 = vpack.c.bf16 %v275_v32, %v274_v31  ;;  %v628_v37 = vpack.c.bf16 %v293_v34, %v292_v33  ;;  %v276_v38 = vld [vmem:[#allocation10 + $0x30] sm:$0xff]  ;;  %v277_v39 = vld [vmem:[#allocation10 + $0x38] sm:$0xff]  ;;  %v294_v40 = vld [vmem:[#allocation10 + $0xc0] sm:$0xff] }
  0x77   :  { %v295_v41 = vld [vmem:[#allocation10 + $0xc8] sm:$0xff]  ;;  %v630_v42 = vpack.c.bf16 %v277_v39, %v276_v38  ;;  %v278_v44 = vld [vmem:[#allocation10 + $0x40] sm:$0xff]  ;;  %v296_v46 = vld [vmem:[#allocation10 + $0xd0] sm:$0xff] }
  0x78   :  { %545 = vmatmul.mubr.msk.f32.vlgmr.msra.gmra.mrb[0].mxu0 %vm116_vm0, %v971_v27  ;;  %623 = vmatpush3.bf16.msra.mxu1 %v622_v29  ;;  %v632_v43 = vpack.c.bf16 %v295_v41, %v294_v40  ;;  %v279_v45 = vld [vmem:[#allocation10 + $0x48] sm:$0xff]  ;;  %v297_v47 = vld [vmem:[#allocation10 + $0xd8] sm:$0xff]  ;;  %v280_v50 = vld [vmem:[#allocation10 + $0x50] sm:$0xff] }
  0x79   :  { %198 = vmatpush1.msra.mxu0 %v191_v28  ;;  %261 = vmatprep.mubr.f32.mxu0 %v842_v0  ;;  %v634_v48 = vpack.c.bf16 %v279_v45, %v278_v44  ;;  %v636_v49 = vpack.c.bf16 %v297_v47, %v296_v46  ;;  %v281_v51 = vld [vmem:[#allocation10 + $0x58] sm:$0xff]  ;;  %v298_v53 = vld [vmem:[#allocation10 + $0xe0] sm:$0xff]  ;;  %v299_v54 = vld [vmem:[#allocation10 + $0xe8] sm:$0xff] }
  0x7a   :  { %592 = vmatprep.subr.mxu0 %v842_v0  ;;  %625 = vmatprep.subr.bf16.mxu1 %v624_v30  ;;  %v638_v52 = vpack.c.bf16 %v281_v51, %v280_v50  ;;  %v640_v55 = vpack.c.bf16 %v299_v54, %v298_v53  ;;  %v282_v56 = vld [vmem:[#allocation10 + $0x60] sm:$0xff]  ;;  %v283_v57 = vld [vmem:[#allocation10 + $0x68] sm:$0xff]  ;;  %v300_v59 = vld [vmem:[#allocation10 + $0xf0] sm:$0xff] }
  0x7b   :  { %v642_v58 = vpack.c.bf16 %v283_v57, %v282_v56  ;;  %v301_v60 = vld [vmem:[#allocation10 + $0xf8] sm:$0xff]  ;;  %v302_v61 = vld [vmem:[%s1006_s5] sm:$0xff]  ;;  %v284_v63 = vld [vmem:[#allocation10 + $0x70] sm:$0xff] }
  0x7c   :  { %546 = vmatmul.mubr.msk.f32.vlgmr.msra.gmra.mrb[2].mxu0 %vm193_vm1, %v106_v35  ;;  %627 = vmatpush3.bf16.msra.mxu1 %v626_v36  ;;  %v644_v62 = vpack.c.bf16 %v301_v60, %v300_v59  ;;  %v285_v1 = vld [vmem:[#allocation10 + $0x78] sm:$0xff]  ;;  %v443_v3 = vld [vmem:[#allocation11] sm:$0xff]  ;;  %v444_v4 = vld [vmem:[#allocation11 + $0x8] sm:$0xff] }
  0x7d   :  { %629 = vmatprep.subr.bf16.mxu1 %v628_v37  ;;  %593 = vmatpush3.msra.mxu0 %v302_v61  ;;  %v646_v2 = vpack.c.bf16 %v285_v1, %v284_v63  ;;  %v649_v5 = vpack.c.bf16 %v444_v4, %v443_v3  ;;  %v445_v7 = vld [vmem:[#allocation11 + $0x10] sm:$0xff]  ;;  %v446_v8 = vld [vmem:[#allocation11 + $0x18] sm:$0xff]  ;;  %v549_v23 = vld [vmem:[%s1008_s7] ss:$0 sm:$0xff] }
  0x7e   :  { %594 = vmatprep.mubr.msk.f32.mxu0 %vm843_vm2, %v842_v0  ;;  %648 = vmatprep.subr.bf16.mxu0 %v844_v6  ;;  %v652_v9 = vpack.c.bf16 %v446_v8, %v445_v7 }
  0x80   :  { %631 = vmatpush3.bf16.msra.mxu1 %v630_v42  ;;  %595 = vmatmul.mubr.msk.f32.vlgmr.msra.gmra.mrb[4].mxu0 %vm193_vm1, %v106_v35 }
  0x81   :  { %633 = vmatprep.subr.bf16.mxu1 %v632_v43  ;;  %650 = vmatpush3.bf16.msra.mxu0 %v649_v5 }
  0x82   :  { %605 = vmatprep.mubr.msk.f32.mxu0 %vm843_vm2, %v842_v0  ;;  %651 = vmatprep.subr.bf16.mxu0 %v844_v6 }
  0x84   :  { %635 = vmatpush3.bf16.msra.mxu1 %v634_v48 }
  0x85   :  { %637 = vmatprep.subr.bf16.mxu1 %v636_v49  ;;  %653 = vmatpush3.bf16.msra.mxu0 %v652_v9 }
  0x88   :  { %639 = vmatpush3.bf16.msra.mxu1 %v638_v52  ;;  %606 = vmatmul.mubr.msk.f32.vlgmr.msra.gmra.mrb[6].mxu0 %vm116_vm0, %v971_v27 }
  0x89   :  { %641 = vmatprep.subr.bf16.mxu1 %v640_v55 }
  0x8c   :  { %643 = vmatpush3.bf16.msra.mxu1 %v642_v58 }
  0x8d   :  { %645 = vmatprep.subr.bf16.mxu1 %v644_v62 }
  0x90   :  { %647 = vmatpush3.bf16.msra.mxu1 %v646_v2 }
 0x14b   :  { %v186_v10 = vpop.f32.mrb[0].mxu0 }
 0x14c   :  { %v188_v11 = vpop.f32.mrb[1].mxu0 }
 0x14f   :  { %v263_v12 = vpop.f32.mrb[2].mxu0 }
 0x150   :  { %v268_v13 = vmul.f32 %v263_v12, %v186_v10  ;;  %v265_v14 = vpop.f32.mrb[3].mxu0 }
 0x151   :  { %v269_v15 = vmul.f32 %v265_v14, %v188_v11 }
 0x153   :  { %437 = vmatprep.mubr.f32.mxu1 %v269_v15  ;;  %v369_v16 = vpop.f32.mrb[4].mxu0 }
 0x154   :  { %438 = vmatmul.mubr.f32.vlgmr.msra.gmra.mrb[0].mxu1 %v268_v13  ;;  %v596_v17 = vpop.f32.mrb[5].mxu0 }
 0x15b   :  { %v513_v18 = vpop.f32.mrb[6].mxu0 }
 0x15c   :  { %v607_v19 = vpop.f32.mrb[7].mxu0 }
 0x227   :  { %v584_v20 = vpop.f32.mrb[0].mxu1 }
 0x228   :  { %v585_v21 = vpop.f32.mrb[1].mxu1 }
 0x229   :  { %v586_v0 = vadd.f32 %v585_v21, %v584_v20 }
 0x22b   :  { %v440_v22 = vadd.f32 %v586_v0, %v369_v16 }
 0x22d   :  { %v517_v24 = vadd.f32 %v513_v18, %v440_v22 }
 0x22f   :  { %v525_v25 = vadd.f32 %v549_v23, %v517_v24 }
 0x231   :  { %526 = vst [vmem:[#allocation13] sm:$0xff] %v525_v25 }
 0x232   :  { %811 = shalt.err (!%p808_p10)
}
 0x233   :  { %s812_s15 = scalar_lea.hbm %s1009_s8, 128 }
 0x234   :  { %p813_p11 = scmp.ne.s32.totalorder %s1009_s8, %s812_s15  ;;  %p816_p12 = scmp.lt.u32.totalorder %s812_s15, %s1009_s8 }
 0x236   :  { %p818_p13 = pnand %p816_p12, %p813_p11 }
 0x238   :  { %821 = shalt.err (!%p818_p13)
}
 0x239   :  { %536 = dma.vmem_to_hbm [thread:$0]  %s534_s11, 128, %s1009_s8, [#allocation4]  }
 0x23a   :  { %830 = dma.done.wait [#allocation4], 128  }
 0x23b   :  { %831 = vsyncadd [#allocation4], 4294967168 }
 0x23c   :  { %540 = vsyncpa [#allocation3], 1 }
 0x23d   :  { %541 = vsyncpa [#allocation6], 1 }
 0x23e   :  { %542 = vsyncpa [#allocation9], 1 }
 0x23f   :  { %543 = vsyncpa [#allocation12], 1 }
 0x240   :  { %544 = vsyncpa [#allocation4], 1 }

</bundles_post_ra>
